<compile_context>
chip_gen: v7x
topology: tpu7x:2x2x1
jax: 0.10.0
libtpu: 0.0.40
codegen_flags: <defaults>
</compile_context>

<pallas_src>
import jax
import jax.numpy as jnp
from jax.experimental import pallas as pl
from jax.experimental.pallas import tpu as pltpu


# ----------------------------- model dims -----------------------------------
B, C_IN, H, W = 2, 4, 16, 16       # input (NCHW), like the PyTorch module
KH, KW = 3, 3                      # conv kernel (valid padding)
OH, OW = H - KH + 1, W - KW + 1    # 14 x 14
OHW = OH * OW                      # 196
K9C = KH * KW * C_IN               # 36  (im2col inner dim)
CF = 8                             # conv feature channels
EMB = 32                           # pretrained embedding dim
HID = 16                           # additional_layers hidden dim
OUT = 1                            # regression output

B_PAD = 8                          # pad batch to a full sublane group
LANES = 128                        # lane-dense packed output width


# ----------------------------- Pallas kernel --------------------------------
def finetune_kernel(patches_ref, pool_ref, wconv_ref, bconv_ref,
                    wea_ref, bea_ref, wpack_ref, bpack_ref, out_ref):
    # conv (as one batched matmul over all images' patches) + bias + ReLU
    conv = jnp.dot(patches_ref[...], wconv_ref[...],
                   preferred_element_type=jnp.float32) + bconv_ref[...]  # (B*OHW, CF)
    conv = jnp.maximum(conv, 0.0)

    # global average pool over spatial positions, done on the MXU with a
    # block-diagonal pooling matrix (rows >= B are zero -> padding rows)
    pooled = jnp.dot(pool_ref[...], conv,
                     preferred_element_type=jnp.float32)                 # (B_PAD, CF)

    # fused (embedding Linear ∘ additional Linear) + ReLU  -> emb_add
    emb_add = jnp.maximum(
        jnp.dot(pooled, wea_ref[...],
                preferred_element_type=jnp.float32) + bea_ref[...], 0.0)  # (B_PAD, HID)

    # packed final projection: lane 0 = regression output (w_fin, b_fin),
    # lanes OUT..OUT+HID = identity copy of emb_add, remaining lanes zero.
    out_ref[...] = (jnp.dot(emb_add, wpack_ref[...],
                            preferred_element_type=jnp.float32)
                    + bpack_ref[...])                                     # (B_PAD, 128)


# ----------------------------- wrapper ---------------------------------------
def _im2col_nhwc(x_nhwc):
    """(B, H, W, C) -> (B, OH*OW, KH*KW*C), patch order (kh, kw, cin)."""
    cols = []
    for i in range(KH):
        for j in range(KW):
            cols.append(x_nhwc[:, i:i + OH, j:j + OW, :])        # (B, OH, OW, C)
    patches = jnp.stack(cols, axis=3)                            # (B, OH, OW, 9, C)
    return patches.reshape(B, OHW, K9C)


def finetune_forward(x_nchw, params, get_embeddings_additional_layer=False):
    # layout: NCHW (PyTorch) -> NHWC, im2col once for the whole batch, flatten
    x_nhwc = jnp.transpose(x_nchw, (0, 2, 3, 1)).astype(jnp.float32)
    patches = _im2col_nhwc(x_nhwc).reshape(B * OHW, K9C)          # (392, 36)
    # TODO(synk): at larger shapes, feed x_nhwc directly and do 9 statically
    # sliced dots in-kernel to avoid the ~7x im2col HBM inflation.

    # block-diagonal mean-pooling matrix, padded to B_PAD rows
    row_ids = jnp.arange(B_PAD, dtype=jnp.int32)[:, None]          # (B_PAD, 1)
    col_bid = (jnp.arange(B * OHW, dtype=jnp.int32) // OHW)[None]  # (1, B*OHW)
    pool = jnp.where((row_ids == col_bid) & (row_ids < B),
                     jnp.float32(1.0 / OHW), jnp.float32(0.0))     # (B_PAD, B*OHW)

    # fuse embedding Linear and additional Linear (no activation in between)
    w_ea = params["w_emb"] @ params["w_add"]                       # (CF, HID)
    b_ea = params["b_emb"] @ params["w_add"] + params["b_add"]     # (1, HID)

    # lane-dense packed final projection
    w_pack = jnp.zeros((HID, LANES), jnp.float32)
    w_pack = w_pack.at[:, 0:OUT].set(params["w_fin"])
    w_pack = w_pack.at[:, OUT:OUT + HID].set(jnp.eye(HID, dtype=jnp.float32))
    b_pack = jnp.zeros((1, LANES), jnp.float32)
    b_pack = b_pack.at[:, 0:OUT].set(params["b_fin"])

    vmem = pl.BlockSpec(memory_space=pltpu.MemorySpace.VMEM)
    slab = pl.pallas_call(
        finetune_kernel,
        out_shape=jax.ShapeDtypeStruct((B_PAD, LANES), jnp.float32),
        in_specs=[vmem] * 8,
        out_specs=vmem,
    )(patches, pool,
      params["w_conv"], params["b_conv"],
      w_ea, b_ea, w_pack, b_pack)

    out = slab[:B, 0:OUT]                    # (B, 1)  regression output
    emb = slab[:B, OUT:OUT + HID]            # (B, HID) additional-layer embeddings
    if get_embeddings_additional_layer:
        return out, emb
    return out


# ----------------------------- reference (pure JAX, unfused) -----------------
def finetune_reference(x_nchw, params):
    x_nhwc = jnp.transpose(x_nchw, (0, 2, 3, 1)).astype(jnp.float32)
    patches = _im2col_nhwc(x_nhwc)                                 # (B, OHW, K9C)
    conv = jnp.maximum(patches @ params["w_conv"] + params["b_conv"], 0.0)
    pooled = jnp.mean(conv, axis=1)                                # (B, CF)
    emb_pre = pooled @ params["w_emb"] + params["b_emb"]
    emb_add = jnp.maximum(emb_pre @ params["w_add"] + params["b_add"], 0.0)
    out = emb_add @ params["w_fin"] + params["b_fin"]
    return out, emb_add


# ----------------------------- params ----------------------------------------
def init_params(key):
    ks = jax.random.split(key, 4)
    return {
        "w_conv": jax.random.normal(ks[0], (K9C, CF), jnp.float32) * 0.1,
        "b_conv": jnp.zeros((1, CF), jnp.float32) + 0.01,
        "w_emb":  jax.random.normal(ks[1], (CF, EMB), jnp.float32) * 0.1,
        "b_emb":  jnp.zeros((1, EMB), jnp.float32),
        "w_add":  jax.random.normal(ks[2], (EMB, HID), jnp.float32) * 0.1,
        "b_add":  jnp.zeros((1, HID), jnp.float32) + 0.01,
        "w_fin":  jax.random.normal(ks[3], (HID, OUT), jnp.float32) * 0.1,
        "b_fin":  jnp.zeros((1, OUT), jnp.float32),
    }


if __name__ == "__main__":
    key = jax.random.PRNGKey(0)
    kx, kp = jax.random.split(key)
    x = jax.random.normal(kx, (B, C_IN, H, W), jnp.float32)        # NCHW like PyTorch
    params = init_params(kp)

    out, emb = finetune_forward(x, params, get_embeddings_additional_layer=True)
    out = jax.block_until_ready(out)
    emb = jax.block_until_ready(emb)

    ref_out, ref_emb = finetune_reference(x, params)
    assert out.shape == (B, OUT) and emb.shape == (B, HID)
    assert jnp.allclose(out, ref_out, rtol=1e-3, atol=1e-4), (out, ref_out)
    assert jnp.allclose(emb, ref_emb, rtol=1e-3, atol=1e-4), (emb, ref_emb)

    print("KERNEL_OK")
</pallas_src>

<mosaic_0001>
module attributes {stable_mosaic.version = 11 : i64} {
  func.func @finetune_kernel(%arg0: memref<392x36xf32, #tpu.memory_space<vmem>>, %arg1: memref<8x392xf32, #tpu.memory_space<vmem>>, %arg2: memref<36x8xf32, #tpu.memory_space<vmem>>, %arg3: memref<1x8xf32, #tpu.memory_space<vmem>>, %arg4: memref<8x16xf32, #tpu.memory_space<vmem>>, %arg5: memref<1x16xf32, #tpu.memory_space<vmem>>, %arg6: memref<16x128xf32, #tpu.memory_space<vmem>>, %arg7: memref<1x128xf32, #tpu.memory_space<vmem>>, %arg8: memref<8x128xf32, #tpu.memory_space<vmem>>) attributes {dimension_semantics = [], scalar_prefetch = 0 : i64, scratch_operands = 0 : i64, tpu.core_type = #tpu.core_type<tc>} {
    %c0 = arith.constant 0 : index
    %c0_0 = arith.constant 0 : index
    %0 = vector.load %arg0[%c0, %c0_0] : memref<392x36xf32, #tpu.memory_space<vmem>>, vector<392x36xf32>
    %c0_1 = arith.constant 0 : index
    %c0_2 = arith.constant 0 : index
    %1 = vector.load %arg2[%c0_1, %c0_2] : memref<36x8xf32, #tpu.memory_space<vmem>>, vector<36x8xf32>
    %cst = arith.constant dense<0.000000e+00> : vector<392x8xf32>
    %2 = tpu.matmul %0, %1, %cst {dimension_numbers = #tpu.dot_dimension_numbers<[1], [0], [0], [1], [0, 0, 1, 1], [], []>} : vector<392x36xf32>, vector<36x8xf32>, vector<392x8xf32> -> vector<392x8xf32>
    %c0_3 = arith.constant 0 : index
    %c0_4 = arith.constant 0 : index
    %3 = vector.load %arg3[%c0_3, %c0_4] : memref<1x8xf32, #tpu.memory_space<vmem>>, vector<1x8xf32>
    %4 = vector.broadcast %3 : vector<1x8xf32> to vector<392x8xf32>
    %5 = arith.addf %2, %4 : vector<392x8xf32>
    %cst_5 = arith.constant 0.000000e+00 : f32
    %6 = vector.broadcast %cst_5 : f32 to vector<392x8xf32>
    %7 = arith.maximumf %5, %6 : vector<392x8xf32>
    %c0_6 = arith.constant 0 : index
    %c0_7 = arith.constant 0 : index
    %8 = vector.load %arg1[%c0_6, %c0_7] : memref<8x392xf32, #tpu.memory_space<vmem>>, vector<8x392xf32>
    %cst_8 = arith.constant dense<0.000000e+00> : vector<8x8xf32>
    %9 = tpu.matmul %8, %7, %cst_8 {dimension_numbers = #tpu.dot_dimension_numbers<[1], [0], [0], [1], [0, 0, 1, 1], [], []>} : vector<8x392xf32>, vector<392x8xf32>, vector<8x8xf32> -> vector<8x8xf32>
    %c0_9 = arith.constant 0 : index
    %c0_10 = arith.constant 0 : index
    %10 = vector.load %arg4[%c0_9, %c0_10] : memref<8x16xf32, #tpu.memory_space<vmem>>, vector<8x16xf32>
    %cst_11 = arith.constant dense<0.000000e+00> : vector<8x16xf32>
    %11 = tpu.matmul %9, %10, %cst_11 {dimension_numbers = #tpu.dot_dimension_numbers<[1], [0], [0], [1], [0, 0, 1, 1], [], []>} : vector<8x8xf32>, vector<8x16xf32>, vector<8x16xf32> -> vector<8x16xf32>
    %c0_12 = arith.constant 0 : index
    %c0_13 = arith.constant 0 : index
    %12 = vector.load %arg5[%c0_12, %c0_13] : memref<1x16xf32, #tpu.memory_space<vmem>>, vector<1x16xf32>
    %13 = vector.broadcast %12 : vector<1x16xf32> to vector<8x16xf32>
    %14 = arith.addf %11, %13 : vector<8x16xf32>
    %cst_14 = arith.constant 0.000000e+00 : f32
    %15 = vector.broadcast %cst_14 : f32 to vector<8x16xf32>
    %16 = arith.maximumf %14, %15 : vector<8x16xf32>
    %c0_15 = arith.constant 0 : index
    %c0_16 = arith.constant 0 : index
    %17 = vector.load %arg6[%c0_15, %c0_16] : memref<16x128xf32, #tpu.memory_space<vmem>>, vector<16x128xf32>
    %cst_17 = arith.constant dense<0.000000e+00> : vector<8x128xf32>
    %18 = tpu.matmul %16, %17, %cst_17 {dimension_numbers = #tpu.dot_dimension_numbers<[1], [0], [0], [1], [0, 0, 1, 1], [], []>} : vector<8x16xf32>, vector<16x128xf32>, vector<8x128xf32> -> vector<8x128xf32>
    %c0_18 = arith.constant 0 : index
    %c0_19 = arith.constant 0 : index
    %19 = vector.load %arg7[%c0_18, %c0_19] : memref<1x128xf32, #tpu.memory_space<vmem>>, vector<1x128xf32>
    %20 = vector.broadcast %19 : vector<1x128xf32> to vector<8x128xf32>
    %21 = arith.addf %18, %20 : vector<8x128xf32>
    %c0_20 = arith.constant 0 : index
    %c0_21 = arith.constant 0 : index
    %22 = vector.load %arg8[%c0_20, %c0_21] : memref<8x128xf32, #tpu.memory_space<vmem>>, vector<8x128xf32>
    tpu.vector_store %arg8[%c0_20, %c0_21], %21 {strides = array<i32>} : memref<8x128xf32, #tpu.memory_space<vmem>>, vector<8x128xf32>,
    return
  }
}

</mosaic_0001>

<bundles_post_ra>
// kernel: tpu_custom_call.1
= control target key start
LH: loop header
LB: loop body
LE: loop exit
PB: predicated region body
PF: predicated region fallthrough
CT: control target
= control target key end

     0   :  { %v1348_v3 = vmov 0.0|0.0   ;;  %vm1349_vm0 = vmmov 0   ;;  %v1350_v6 = vmov 0.0   ;;  %vm239_vm1 = vcmask 1043456   ;;  %s1876_s0 = inlined_call_operand.vmem [shape: f32[392,36], index: 0, kind: input, shape index: {}]   ;;  %s1877_s1 = inlined_call_operand.vmem [shape: f32[8,392], index: 1, kind: input, shape index: {}]   ;;  %s1878_s2 = inlined_call_operand.vmem [shape: f32[36,8], index: 2, kind: input, shape index: {}]   ;;  %s1879_s3 = inlined_call_operand.vmem [shape: f32[1,8], index: 3, kind: input, shape index: {}]   ;;  %s1880_s4 = inlined_call_operand.vmem [shape: f32[8,16], index: 4, kind: input, shape index: {}]   ;;  %s1881_s5 = inlined_call_operand.vmem [shape: f32[1,16], index: 5, kind: input, shape index: {}]   ;;  %s1882_s6 = inlined_call_operand.vmem [shape: f32[16,128], index: 6, kind: input, shape index: {}]   ;;  %s1883_s7 = inlined_call_operand.vmem [shape: f32[1,128], index: 7, kind: input, shape index: {}]   ;;  %s1884_s8 = inlined_call_operand.hbm [shape: f32[8,128], index: 8, kind: output, shape index: {}]  }
   0x1   :  { %v79_v0 = vld [vmem:[%s1878_s2] sm:$0xff]  ;;  %v80_v1 = vld [vmem:[%s1878_s2 + $0x8] sm:$0xff]  ;;  %v81_v2 = vld [vmem:[%s1878_s2 + $0x10] sm:$0xff]  ;;  %1249 = vmatprep.subr.bf16.mxu0 %v1348_v3  ;;  %1314 = vmatprep.subr.bf16.mxu1 %v1348_v3  ;;  %vm91_vm2 = vcmask 293888  }
   0x2   :  { %v1250_v4 = vpack.c.bf16 %v80_v1, %v79_v0  ;;  %v82_v5 = vld [vmem:[%s1878_s2 + $0x18] sm:$0xff]  ;;  %1090 = vmatprep.mubr.msk.f32.mxu0 %vm1349_vm0, %v1350_v6  ;;  %1183 = vmatprep.mubr.msk.f32.mxu1 %vm1349_vm0, %v1350_v6  ;;  %v83_v8 = vld [vmem:[%s1878_s2 + $0x20] sm:$0xf]  ;;  %v31_v11 = vld [vmem:[%s1876_s0 + $0x8] sm:$0xff] }
   0x3   :  { %v1253_v7 = vpack.c.bf16 %v82_v5, %v81_v2  ;;  %v30_v9 = vld [vmem:[%s1876_s0] sm:$0xff]  ;;  %v61_v10 = vld [vmem:[%s1876_s0 + $0xf8] sm:$0xff]  ;;  %v32_v13 = vld [vmem:[%s1876_s0 + $0x10] sm:$0xff] }
   0x4   :  { %1251 = vmatpush3.bf16.msra.mxu0 %v1250_v4  ;;  %1317 = vmatpush3.bf16.msra.mxu1 %v1250_v4  ;;  %v62_v12 = vld [vmem:[%s1876_s0 + $0x100] sm:$0xff]  ;;  %v63_v14 = vld [vmem:[%s1876_s0 + $0x108] sm:$0xff] }
   0x5   :  { %1252 = vmatprep.subr.bf16.mxu0 %v1348_v3  ;;  %1315 = vmatprep.subr.bf16.mxu1 %v1348_v3 }
   0x8   :  { %1254 = vmatpush3.bf16.msra.mxu0 %v1253_v7  ;;  %1318 = vmatpush3.bf16.msra.mxu1 %v1253_v7 }
   0x9   :  { %1088 = vmatprep.subr.mxu0 %v1350_v6  ;;  %1316 = vmatprep.subr.mxu1 %v1350_v6 }
   0xc   :  { %1089 = vmatpush3.msk.msra.mxu0 %vm239_vm1, %v83_v8  ;;  %1319 = vmatpush3.msk.msra.mxu1 %vm239_vm1, %v83_v8 }
   0xd   :  { %1091 = vmatmul.mubr.msk.f32.vlgmr.msra.gmra.mrb[0].mxu0 %vm91_vm2, %v30_v9  ;;  %1184 = vmatmul.mubr.msk.f32.vlgmr.msra.gmra.mrb[0].mxu1 %vm91_vm2, %v61_v10 }
   0xe   :  { %1093 = vmatprep.mubr.msk.f32.mxu0 %vm1349_vm0, %v1350_v6  ;;  %1186 = vmatprep.mubr.msk.f32.mxu1 %vm1349_vm0, %v1350_v6 }
  0x11   :  { %1094 = vmatmul.mubr.msk.f32.gmra.mrb[2].mxu0 %vm91_vm2, %v31_v11  ;;  %1187 = vmatmul.mubr.msk.f32.gmra.mrb[2].mxu1 %vm91_vm2, %v62_v12 }
  0x12   :  { %1096 = vmatprep.mubr.msk.f32.mxu0 %vm1349_vm0, %v1350_v6  ;;  %1189 = vmatprep.mubr.msk.f32.mxu1 %vm1349_vm0, %v1350_v6 }
  0x13   :  { %13 = vsyncpa [#allocation3], 0  ;;  %v33_v15 = vld [vmem:[%s1876_s0 + $0x18] sm:$0xff]  ;;  %v64_v16 = vld [vmem:[%s1876_s0 + $0x110] sm:$0xff]  ;;  %vm606_vm3 = vcmask 64512   ;;  %vm841_vm4 = vcmask 130048  }
  0x14   :  { %v34_v17 = vld [vmem:[%s1876_s0 + $0x20] sm:$0xff]  ;;  %v65_v18 = vld [vmem:[%s1876_s0 + $0x118] sm:$0xff]  ;;  %v35_v19 = vld [vmem:[%s1876_s0 + $0x28] sm:$0xff]  ;;  %s1351_s14 = smov [#allocation2]  }
  0x15   :  { %1097 = vmatmul.mubr.msk.f32.gmra.mrb[4].mxu0 %vm91_vm2, %v32_v13  ;;  %1190 = vmatmul.mubr.msk.f32.gmra.mrb[4].mxu1 %vm91_vm2, %v63_v14  ;;  %v66_v20 = vld [vmem:[%s1876_s0 + $0x120] sm:$0xff]  ;;  %v36_v21 = vld [vmem:[%s1876_s0 + $0x30] sm:$0xff]  ;;  %v67_v22 = vld [vmem:[%s1876_s0 + $0x128] sm:$0xff]  ;;  %s922_s15 = sshll.u32 %s1351_s14, 4  ;;  %s923_s15 = int_to_ptr.vmem [resolvable:$true] %s922_s15 }
  0x16   :  { %1099 = vmatprep.mubr.msk.f32.mxu0 %vm1349_vm0, %v1350_v6  ;;  %1192 = vmatprep.mubr.msk.f32.mxu1 %vm1349_vm0, %v1350_v6  ;;  %v37_v23 = vld [vmem:[%s1876_s0 + $0x38] sm:$0xff]  ;;  %v68_v24 = vld [vmem:[%s1876_s0 + $0x130] sm:$0xff]  ;;  %v38_v25 = vld [vmem:[%s1876_s0 + $0x40] sm:$0xff]  ;;  %p1329_p1 = scmp.lt.s32.totalorder %s923_s15, %s923_s15 }
  0x17   :  { %v69_v26 = vld [vmem:[%s1876_s0 + $0x138] sm:$0xff]  ;;  %v39_v27 = vld [vmem:[%s1876_s0 + $0x48] sm:$0xff]  ;;  %v70_v28 = vld [vmem:[%s1876_s0 + $0x140] sm:$0xff] }
  0x18   :  { %v40_v29 = vld [vmem:[%s1876_s0 + $0x50] sm:$0xff]  ;;  %v71_v30 = vld [vmem:[%s1876_s0 + $0x148] sm:$0xff]  ;;  %v41_v31 = vld [vmem:[%s1876_s0 + $0x58] sm:$0xff] }
  0x19   :  { %1100 = vmatmul.mubr.msk.f32.gmra.mrb[6].mxu0 %vm91_vm2, %v33_v15  ;;  %1193 = vmatmul.mubr.msk.f32.gmra.mrb[6].mxu1 %vm91_vm2, %v64_v16  ;;  %v72_v32 = vld [vmem:[%s1876_s0 + $0x150] sm:$0xff]  ;;  %v42_v33 = vld [vmem:[%s1876_s0 + $0x60] sm:$0xff]  ;;  %v73_v34 = vld [vmem:[%s1876_s0 + $0x158] sm:$0xff] }
  0x1a   :  { %1102 = vmatprep.mubr.msk.f32.mxu0 %vm1349_vm0, %v1350_v6  ;;  %1195 = vmatprep.mubr.msk.f32.mxu1 %vm1349_vm0, %v1350_v6  ;;  %v43_v35 = vld [vmem:[%s1876_s0 + $0x68] sm:$0xff]  ;;  %v74_v36 = vld [vmem:[%s1876_s0 + $0x160] sm:$0xff]  ;;  %v44_v37 = vld [vmem:[%s1876_s0 + $0x70] sm:$0xff] }
  0x1b   :  { %v75_v38 = vld [vmem:[%s1876_s0 + $0x168] sm:$0xff]  ;;  %v45_v39 = vld [vmem:[%s1876_s0 + $0x78] sm:$0xff]  ;;  %v76_v40 = vld [vmem:[%s1876_s0 + $0x170] sm:$0xff] }
  0x1c   :  { %v46_v41 = vld [vmem:[%s1876_s0 + $0x80] sm:$0xff]  ;;  %v77_v42 = vld [vmem:[%s1876_s0 + $0x178] sm:$0xff]  ;;  %v47_v43 = vld [vmem:[%s1876_s0 + $0x88] sm:$0xff] }
  0x1d   :  { %1103 = vmatmul.mubr.msk.f32.gmra.mrb[8].mxu0 %vm91_vm2, %v34_v17  ;;  %1196 = vmatmul.mubr.msk.f32.gmra.mrb[8].mxu1 %vm91_vm2, %v65_v18  ;;  %v78_v44 = vld [vmem:[%s1876_s0 + $0x180] sm:$0xff]  ;;  %v48_v45 = vld [vmem:[%s1876_s0 + $0x90] sm:$0xff]  ;;  %v49_v46 = vld [vmem:[%s1876_s0 + $0x98] sm:$0xff] }
  0x1e   :  { %1105 = vmatprep.mubr.msk.f32.mxu0 %vm1349_vm0, %v1350_v6  ;;  %1198 = vmatprep.mubr.msk.f32.mxu1 %vm1349_vm0, %v1350_v6  ;;  %v50_v47 = vld [vmem:[%s1876_s0 + $0xa0] sm:$0xff]  ;;  %v51_v48 = vld [vmem:[%s1876_s0 + $0xa8] sm:$0xff]  ;;  %v52_v49 = vld [vmem:[%s1876_s0 + $0xb0] sm:$0xff] }
  0x1f   :  { %v53_v50 = vld [vmem:[%s1876_s0 + $0xb8] sm:$0xff]  ;;  %v54_v51 = vld [vmem:[%s1876_s0 + $0xc0] sm:$0xff]  ;;  %v55_v52 = vld [vmem:[%s1876_s0 + $0xc8] sm:$0xff] }
  0x20   :  { %v56_v53 = vld [vmem:[%s1876_s0 + $0xd0] sm:$0xff]  ;;  %v57_v54 = vld [vmem:[%s1876_s0 + $0xd8] sm:$0xff]  ;;  %v58_v55 = vld [vmem:[%s1876_s0 + $0xe0] sm:$0xff] }
  0x21   :  { %1106 = vmatmul.mubr.msk.f32.gmra.mrb[10].mxu0 %vm91_vm2, %v35_v19  ;;  %1199 = vmatmul.mubr.msk.f32.gmra.mrb[10].mxu1 %vm91_vm2, %v66_v20  ;;  %v59_v56 = vld [vmem:[%s1876_s0 + $0xe8] sm:$0xff]  ;;  %v60_v57 = vld [vmem:[%s1876_s0 + $0xf0] sm:$0xff]  ;;  %v1715_v58 = vld [vmem:[%s1879_s3] ss:$0 sm:$0xff] }
  0x22   :  { %1108 = vmatprep.mubr.msk.f32.mxu0 %vm1349_vm0, %v1350_v6  ;;  %1201 = vmatprep.mubr.msk.f32.mxu1 %vm1349_vm0, %v1350_v6  ;;  %v603_v61 = vld [vmem:[%s1877_s1 + $0x8] sm:$0xff] }
  0x25   :  { %1109 = vmatmul.mubr.msk.f32.gmra.mrb[12].mxu0 %vm91_vm2, %v36_v21  ;;  %1202 = vmatmul.mubr.msk.f32.gmra.mrb[12].mxu1 %vm91_vm2, %v67_v22 }
  0x26   :  { %1111 = vmatprep.mubr.msk.f32.mxu0 %vm1349_vm0, %v1350_v6  ;;  %1204 = vmatprep.mubr.msk.f32.mxu1 %vm1349_vm0, %v1350_v6 }
  0x29   :  { %1112 = vmatmul.mubr.msk.f32.gmra.mrb[14].mxu0 %vm91_vm2, %v37_v23  ;;  %1205 = vmatmul.mubr.msk.f32.gmra.mrb[14].mxu1 %vm91_vm2, %v68_v24 }
  0x2a   :  { %1114 = vmatprep.mubr.msk.f32.mxu0 %vm1349_vm0, %v1350_v6  ;;  %1207 = vmatprep.mubr.msk.f32.mxu1 %vm1349_vm0, %v1350_v6 }
  0x2d   :  { %1115 = vmatmul.mubr.msk.f32.gmra.mrb[16].mxu0 %vm91_vm2, %v38_v25  ;;  %1208 = vmatmul.mubr.msk.f32.gmra.mrb[16].mxu1 %vm91_vm2, %v69_v26 }
  0x2e   :  { %1117 = vmatprep.mubr.msk.f32.mxu0 %vm1349_vm0, %v1350_v6  ;;  %1210 = vmatprep.mubr.msk.f32.mxu1 %vm1349_vm0, %v1350_v6 }
  0x31   :  { %1118 = vmatmul.mubr.msk.f32.gmra.mrb[18].mxu0 %vm91_vm2, %v39_v27  ;;  %1211 = vmatmul.mubr.msk.f32.gmra.mrb[18].mxu1 %vm91_vm2, %v70_v28 }
  0x32   :  { %1120 = vmatprep.mubr.msk.f32.mxu0 %vm1349_vm0, %v1350_v6  ;;  %1213 = vmatprep.mubr.msk.f32.mxu1 %vm1349_vm0, %v1350_v6 }
  0x35   :  { %1121 = vmatmul.mubr.msk.f32.gmra.mrb[20].mxu0 %vm91_vm2, %v40_v29  ;;  %1214 = vmatmul.mubr.msk.f32.gmra.mrb[20].mxu1 %vm91_vm2, %v71_v30 }
  0x36   :  { %1123 = vmatprep.mubr.msk.f32.mxu0 %vm1349_vm0, %v1350_v6  ;;  %1216 = vmatprep.mubr.msk.f32.mxu1 %vm1349_vm0, %v1350_v6 }
  0x39   :  { %1124 = vmatmul.mubr.msk.f32.gmra.mrb[22].mxu0 %vm91_vm2, %v41_v31  ;;  %1217 = vmatmul.mubr.msk.f32.gmra.mrb[22].mxu1 %vm91_vm2, %v72_v32 }
  0x3a   :  { %1126 = vmatprep.mubr.msk.f32.mxu0 %vm1349_vm0, %v1350_v6  ;;  %1219 = vmatprep.mubr.msk.f32.mxu1 %vm1349_vm0, %v1350_v6 }
  0x3d   :  { %1127 = vmatmul.mubr.msk.f32.gmra.mrb[24].mxu0 %vm91_vm2, %v42_v33  ;;  %1220 = vmatmul.mubr.msk.f32.gmra.mrb[24].mxu1 %vm91_vm2, %v73_v34 }
  0x3e   :  { %1129 = vmatprep.mubr.msk.f32.mxu0 %vm1349_vm0, %v1350_v6  ;;  %1222 = vmatprep.mubr.msk.f32.mxu1 %vm1349_vm0, %v1350_v6 }
  0x41   :  { %1130 = vmatmul.mubr.msk.f32.gmra.mrb[26].mxu0 %vm91_vm2, %v43_v35  ;;  %1223 = vmatmul.mubr.msk.f32.gmra.mrb[26].mxu1 %vm91_vm2, %v74_v36 }
  0x42   :  { %1132 = vmatprep.mubr.msk.f32.mxu0 %vm1349_vm0, %v1350_v6  ;;  %1225 = vmatprep.mubr.msk.f32.mxu1 %vm1349_vm0, %v1350_v6 }
  0x45   :  { %1133 = vmatmul.mubr.msk.f32.gmra.mrb[28].mxu0 %vm91_vm2, %v44_v37  ;;  %1226 = vmatmul.mubr.msk.f32.gmra.mrb[28].mxu1 %vm91_vm2, %v75_v38 }
  0x46   :  { %1135 = vmatprep.mubr.msk.f32.mxu0 %vm1349_vm0, %v1350_v6  ;;  %1228 = vmatprep.mubr.msk.f32.mxu1 %vm1349_vm0, %v1350_v6 }
  0x49   :  { %1136 = vmatmul.mubr.msk.f32.gmra.mrb[30].mxu0 %vm91_vm2, %v45_v39  ;;  %1229 = vmatmul.mubr.msk.f32.gmra.mrb[30].mxu1 %vm91_vm2, %v76_v40 }
  0x4a   :  { %1138 = vmatprep.mubr.msk.f32.mxu0 %vm1349_vm0, %v1350_v6  ;;  %1231 = vmatprep.mubr.msk.f32.mxu1 %vm1349_vm0, %v1350_v6 }
  0x4d   :  { %1139 = vmatmul.mubr.msk.f32.gmra.mrb[32].mxu0 %vm91_vm2, %v46_v41  ;;  %1232 = vmatmul.mubr.msk.f32.gmra.mrb[32].mxu1 %vm91_vm2, %v77_v42 }
  0x4e   :  { %1141 = vmatprep.mubr.msk.f32.mxu0 %vm1349_vm0, %v1350_v6  ;;  %1234 = vmatprep.mubr.msk.f32.mxu1 %vm1349_vm0, %v1350_v6 }
  0x51   :  { %1142 = vmatmul.mubr.msk.f32.gmra.mrb[34].mxu0 %vm91_vm2, %v47_v43  ;;  %1235 = vmatmul.mubr.msk.f32.gmra.mrb[34].mxu1 %vm91_vm2, %v78_v44 }
  0x52   :  { %1144 = vmatprep.mubr.msk.f32.mxu0 %vm1349_vm0, %v1350_v6  ;;  %674 = vmatprep.mubr.f32.mxu1 %v603_v61 }
  0x55   :  { %1145 = vmatmul.mubr.msk.f32.gmra.mrb[36].mxu0 %vm91_vm2, %v48_v45 }
  0x56   :  { %1147 = vmatprep.mubr.msk.f32.mxu0 %vm1349_vm0, %v1350_v6 }
  0x59   :  { %1148 = vmatmul.mubr.msk.f32.gmra.mrb[38].mxu0 %vm91_vm2, %v49_v46 }
  0x5a   :  { %1150 = vmatprep.mubr.msk.f32.mxu0 %vm1349_vm0, %v1350_v6 }
  0x5d   :  { %1151 = vmatmul.mubr.msk.f32.gmra.mrb[40].mxu0 %vm91_vm2, %v50_v47 }
  0x5e   :  { %1153 = vmatprep.mubr.msk.f32.mxu0 %vm1349_vm0, %v1350_v6 }
  0x61   :  { %1154 = vmatmul.mubr.msk.f32.gmra.mrb[42].mxu0 %vm91_vm2, %v51_v48 }
  0x62   :  { %1156 = vmatprep.mubr.msk.f32.mxu0 %vm1349_vm0, %v1350_v6 }
  0x65   :  { %1157 = vmatmul.mubr.msk.f32.gmra.mrb[44].mxu0 %vm91_vm2, %v52_v49 }
  0x66   :  { %1159 = vmatprep.mubr.msk.f32.mxu0 %vm1349_vm0, %v1350_v6 }
  0x69   :  { %1160 = vmatmul.mubr.msk.f32.gmra.mrb[46].mxu0 %vm91_vm2, %v53_v50 }
  0x6a   :  { %1162 = vmatprep.mubr.msk.f32.mxu0 %vm1349_vm0, %v1350_v6 }
  0x6d   :  { %1163 = vmatmul.mubr.msk.f32.gmra.mrb[48].mxu0 %vm91_vm2, %v54_v51 }
  0x6e   :  { %1165 = vmatprep.mubr.msk.f32.mxu0 %vm1349_vm0, %v1350_v6 }
  0x71   :  { %1166 = vmatmul.mubr.msk.f32.gmra.mrb[50].mxu0 %vm91_vm2, %v55_v52 }
  0x72   :  { %1168 = vmatprep.mubr.msk.f32.mxu0 %vm1349_vm0, %v1350_v6 }
  0x75   :  { %1169 = vmatmul.mubr.msk.f32.gmra.mrb[52].mxu0 %vm91_vm2, %v56_v53 }
  0x76   :  { %1171 = vmatprep.mubr.msk.f32.mxu0 %vm1349_vm0, %v1350_v6 }
  0x79   :  { %1172 = vmatmul.mubr.msk.f32.gmra.mrb[54].mxu0 %vm91_vm2, %v57_v54 }
  0x7a   :  { %1174 = vmatprep.mubr.msk.f32.mxu0 %vm1349_vm0, %v1350_v6 }
  0x7d   :  { %1175 = vmatmul.mubr.msk.f32.gmra.mrb[56].mxu0 %vm91_vm2, %v58_v55 }
  0x7e   :  { %1177 = vmatprep.mubr.msk.f32.mxu0 %vm1349_vm0, %v1350_v6 }
  0x81   :  { %1178 = vmatmul.mubr.msk.f32.gmra.mrb[58].mxu0 %vm91_vm2, %v59_v56 }
  0x82   :  { %1180 = vmatprep.mubr.msk.f32.mxu0 %vm1349_vm0, %v1350_v6 }
  0x85   :  { %1181 = vmatmul.mubr.msk.f32.gmra.mrb[60].mxu0 %vm91_vm2, %v60_v57 }
  0xe0   :  { %v309_v59 = vpop.f32.mrb[0].mxu0  ;;  %v1717_v60 = vpop.f32.mrb[0].mxu1 }
  0xe1   :  { %v1092_v62 = vpop.f32.mrb[1].mxu0  ;;  %v1185_v63 = vpop.f32.mrb[1].mxu1  ;;  %v310_v0 = vadd.f32 %v1715_v58, %v309_v59 }
  0xe3   :  { %v553_v9 = vmax.f32 %v310_v0, 0.0 }
  0xe4   :  { %v314_v1 = vpop.f32.mrb[2].mxu0  ;;  %v469_v2 = vpop.f32.mrb[2].mxu1 }
  0xe5   :  { %v315_v4 = vadd.f32 %v1715_v58, %v314_v1  ;;  %v1095_v5 = vpop.f32.mrb[3].mxu0  ;;  %v470_v7 = vadd.f32 %v1715_v58, %v469_v2  ;;  %v1188_v8 = vpop.f32.mrb[3].mxu1 }
  0xe7   :  { %v554_v10 = vmax.f32 %v315_v4, 0.0  ;;  %v585_v15 = vmax.f32 %v470_v7, 0.0 }
  0xe8   :  { %v319_v11 = vpop.f32.mrb[4].mxu0  ;;  %v474_v12 = vpop.f32.mrb[4].mxu1 }
  0xe9   :  { %v1725_v13 = vpack.c.bf16 %v554_v10, %v553_v9  ;;  %v1098_v14 = vpop.f32.mrb[5].mxu0  ;;  %v475_v16 = vadd.f32 %v1715_v58, %v474_v12  ;;  %v1191_v17 = vpop.f32.mrb[5].mxu1  ;;  %v320_v18 = vadd.f32 %v1715_v58, %v319_v11 }
  0xeb   :  { %v586_v19 = vmax.f32 %v475_v16, 0.0  ;;  %v555_v27 = vmax.f32 %v320_v18, 0.0 }
  0xec   :  { %v324_v20 = vpop.f32.mrb[6].mxu0  ;;  %v479_v21 = vpop.f32.mrb[6].mxu1 }
  0xed   :  { %v325_v22 = vadd.f32 %v1715_v58, %v324_v20  ;;  %v1101_v23 = vpop.f32.mrb[7].mxu0  ;;  %v1730_v24 = vpack.c.bf16 %v586_v19, %v585_v15  ;;  %v480_v25 = vadd.f32 %v1715_v58, %v479_v21  ;;  %v1194_v26 = vpop.f32.mrb[7].mxu1 }
  0xef   :  { %v556_v28 = vmax.f32 %v325_v22, 0.0  ;;  %v587_v33 = vmax.f32 %v480_v25, 0.0 }
  0xf0   :  { %v329_v29 = vpop.f32.mrb[8].mxu0  ;;  %v484_v30 = vpop.f32.mrb[8].mxu1 }
  0xf1   :  { %v1733_v31 = vpack.c.bf16 %v556_v28, %v555_v27  ;;  %v1104_v32 = vpop.f32.mrb[9].mxu0  ;;  %v485_v34 = vadd.f32 %v1715_v58, %v484_v30  ;;  %v1197_v35 = vpop.f32.mrb[9].mxu1  ;;  %v330_v36 = vadd.f32 %v1715_v58, %v329_v29 }
  0xf3   :  { %v588_v37 = vmax.f32 %v485_v34, 0.0  ;;  %v557_v45 = vmax.f32 %v330_v36, 0.0 }
  0xf4   :  { %v334_v38 = vpop.f32.mrb[10].mxu0  ;;  %v489_v39 = vpop.f32.mrb[10].mxu1 }
  0xf5   :  { %v335_v40 = vadd.f32 %v1715_v58, %v334_v38  ;;  %v1107_v41 = vpop.f32.mrb[11].mxu0  ;;  %v1738_v42 = vpack.c.bf16 %v588_v37, %v587_v33  ;;  %v490_v43 = vadd.f32 %v1715_v58, %v489_v39  ;;  %v1200_v44 = vpop.f32.mrb[11].mxu1 }
  0xf7   :  { %v558_v46 = vmax.f32 %v335_v40, 0.0  ;;  %v589_v51 = vmax.f32 %v490_v43, 0.0 }
  0xf8   :  { %v339_v47 = vpop.f32.mrb[12].mxu0  ;;  %v494_v48 = vpop.f32.mrb[12].mxu1 }
  0xf9   :  { %v1741_v49 = vpack.c.bf16 %v558_v46, %v557_v45  ;;  %v1110_v50 = vpop.f32.mrb[13].mxu0  ;;  %v495_v52 = vadd.f32 %v1715_v58, %v494_v48  ;;  %v1203_v53 = vpop.f32.mrb[13].mxu1  ;;  %v340_v54 = vadd.f32 %v1715_v58, %v339_v47 }
  0xfb   :  { %v590_v55 = vmax.f32 %v495_v52, 0.0  ;;  %v559_v1 = vmax.f32 %v340_v54, 0.0 }
  0xfc   :  { %v344_v56 = vpop.f32.mrb[14].mxu0  ;;  %v499_v57 = vpop.f32.mrb[14].mxu1 }
  0xfd   :  { %v345_v59 = vadd.f32 %v1715_v58, %v344_v56  ;;  %v1113_v61 = vpop.f32.mrb[15].mxu0  ;;  %v1746_v62 = vpack.c.bf16 %v590_v55, %v589_v51  ;;  %v500_v63 = vadd.f32 %v1715_v58, %v499_v57  ;;  %v1206_v0 = vpop.f32.mrb[15].mxu1 }
  0xff   :  { %v560_v2 = vmax.f32 %v345_v59, 0.0  ;;  %v591_v9 = vmax.f32 %v500_v63, 0.0 }
 0x100   :  { %v349_v4 = vpop.f32.mrb[16].mxu0  ;;  %v504_v5 = vpop.f32.mrb[16].mxu1 }
 0x101   :  { %v1749_v7 = vpack.c.bf16 %v560_v2, %v559_v1  ;;  %v1116_v8 = vpop.f32.mrb[17].mxu0  ;;  %v505_v10 = vadd.f32 %v1715_v58, %v504_v5  ;;  %v1209_v11 = vpop.f32.mrb[17].mxu1  ;;  %v350_v12 = vadd.f32 %v1715_v58, %v349_v4 }
 0x103   :  { %v592_v14 = vmax.f32 %v505_v10, 0.0  ;;  %v561_v22 = vmax.f32 %v350_v12, 0.0 }
 0x104   :  { %v354_v15 = vpop.f32.mrb[18].mxu0  ;;  %v509_v16 = vpop.f32.mrb[18].mxu1 }
 0x105   :  { %v355_v17 = vadd.f32 %v1715_v58, %v354_v15  ;;  %v1119_v18 = vpop.f32.mrb[19].mxu0  ;;  %v1754_v19 = vpack.c.bf16 %v592_v14, %v591_v9  ;;  %v510_v20 = vadd.f32 %v1715_v58, %v509_v16  ;;  %v1212_v21 = vpop.f32.mrb[19].mxu1 }
 0x107   :  { %v562_v23 = vmax.f32 %v355_v17, 0.0  ;;  %v593_v29 = vmax.f32 %v510_v20, 0.0 }
 0x108   :  { %v359_v25 = vpop.f32.mrb[20].mxu0  ;;  %v514_v26 = vpop.f32.mrb[20].mxu1 }
 0x109   :  { %v1757_v27 = vpack.c.bf16 %v562_v23, %v561_v22  ;;  %v1122_v28 = vpop.f32.mrb[21].mxu0  ;;  %v515_v30 = vadd.f32 %v1715_v58, %v514_v26  ;;  %v1215_v32 = vpop.f32.mrb[21].mxu1  ;;  %v360_v33 = vadd.f32 %v1715_v58, %v359_v25 }
 0x10b   :  { %v594_v34 = vmax.f32 %v515_v30, 0.0  ;;  %v563_v43 = vmax.f32 %v360_v33, 0.0 }
 0x10c   :  { %v364_v35 = vpop.f32.mrb[22].mxu0  ;;  %v519_v36 = vpop.f32.mrb[22].mxu1 }
 0x10d   :  { %v365_v37 = vadd.f32 %v1715_v58, %v364_v35  ;;  %v1125_v38 = vpop.f32.mrb[23].mxu0  ;;  %v1762_v39 = vpack.c.bf16 %v594_v34, %v593_v29  ;;  %v520_v40 = vadd.f32 %v1715_v58, %v519_v36  ;;  %v1218_v41 = vpop.f32.mrb[23].mxu1 }
 0x10f   :  { %v564_v44 = vmax.f32 %v365_v37, 0.0  ;;  %v595_v50 = vmax.f32 %v520_v40, 0.0 }
 0x110   :  { %v369_v45 = vpop.f32.mrb[24].mxu0  ;;  %v524_v46 = vpop.f32.mrb[24].mxu1 }
 0x111   :  { %v1765_v47 = vpack.c.bf16 %v564_v44, %v563_v43  ;;  %v1128_v48 = vpop.f32.mrb[25].mxu0  ;;  %v525_v51 = vadd.f32 %v1715_v58, %v524_v46  ;;  %v1221_v52 = vpop.f32.mrb[25].mxu1  ;;  %v370_v53 = vadd.f32 %v1715_v58, %v369_v45 }
 0x113   :  { %v596_v54 = vmax.f32 %v525_v51, 0.0  ;;  %v565_v1 = vmax.f32 %v370_v53, 0.0 }
 0x114   :  { %v374_v55 = vpop.f32.mrb[26].mxu0  ;;  %v529_v56 = vpop.f32.mrb[26].mxu1 }
 0x115   :  { %v375_v57 = vadd.f32 %v1715_v58, %v374_v55  ;;  %v1131_v59 = vpop.f32.mrb[27].mxu0  ;;  %v1770_v61 = vpack.c.bf16 %v596_v54, %v595_v50  ;;  %v530_v63 = vadd.f32 %v1715_v58, %v529_v56  ;;  %v1224_v0 = vpop.f32.mrb[27].mxu1 }
 0x117   :  { %v566_v2 = vmax.f32 %v375_v57, 0.0  ;;  %v597_v10 = vmax.f32 %v530_v63, 0.0 }
 0x118   :  { %v379_v4 = vpop.f32.mrb[28].mxu0  ;;  %v534_v5 = vpop.f32.mrb[28].mxu1 }
 0x119   :  { %v1773_v8 = vpack.c.bf16 %v566_v2, %v565_v1  ;;  %v1134_v9 = vpop.f32.mrb[29].mxu0  ;;  %v535_v11 = vadd.f32 %v1715_v58, %v534_v5  ;;  %v1227_v12 = vpop.f32.mrb[29].mxu1  ;;  %v380_v14 = vadd.f32 %v1715_v58, %v379_v4 }
 0x11b   :  { %v598_v15 = vmax.f32 %v535_v11, 0.0  ;;  %v567_v25 = vmax.f32 %v380_v14, 0.0 }
 0x11c   :  { %v384_v16 = vpop.f32.mrb[30].mxu0  ;;  %v539_v17 = vpop.f32.mrb[30].mxu1 }
 0x11d   :  { %v385_v18 = vadd.f32 %v1715_v58, %v384_v16  ;;  %v1137_v20 = vpop.f32.mrb[31].mxu0  ;;  %v1778_v21 = vpack.c.bf16 %v598_v15, %v597_v10  ;;  %v540_v22 = vadd.f32 %v1715_v58, %v539_v17  ;;  %v1230_v23 = vpop.f32.mrb[31].mxu1 }
 0x11f   :  { %v568_v26 = vmax.f32 %v385_v18, 0.0  ;;  %v599_v33 = vmax.f32 %v540_v22, 0.0 }
 0x120   :  { %v389_v28 = vpop.f32.mrb[32].mxu0  ;;  %v544_v29 = vpop.f32.mrb[32].mxu1 }
 0x121   :  { %v1781_v30 = vpack.c.bf16 %v568_v26, %v567_v25  ;;  %v1140_v32 = vpop.f32.mrb[33].mxu0  ;;  %v545_v34 = vadd.f32 %v1715_v58, %v544_v29  ;;  %v1233_v35 = vpop.f32.mrb[33].mxu1  ;;  %v390_v36 = vadd.f32 %v1715_v58, %v389_v28 }
 0x123   :  { %v600_v37 = vmax.f32 %v545_v34, 0.0  ;;  %v569_v46 = vmax.f32 %v390_v36, 0.0 }
 0x124   :  { %v394_v38 = vpop.f32.mrb[34].mxu0  ;;  %v1785_v40 = vpop.f32.mrb[34].mxu1 }
 0x125   :  { %v395_v41 = vadd.f32 %v1715_v58, %v394_v38  ;;  %v1143_v43 = vpop.f32.mrb[35].mxu0  ;;  %v1788_v44 = vpack.c.bf16 %v600_v37, %v599_v33  ;;  %v1236_v45 = vpop.f32.mrb[35].mxu1 }
 0x127   :  { %v570_v48 = vmax.f32 %v395_v41, 0.0 }
 0x128   :  { %v399_v50 = vpop.f32.mrb[36].mxu0 }
 0x129   :  { %v1255_v51 = vpack.c.bf16 %v570_v48, %v569_v46  ;;  %v1146_v52 = vpop.f32.mrb[37].mxu0  ;;  %v400_v53 = vadd.f32 %v1715_v58, %v399_v50 }
 0x12b   :  { %1256 = vmatprep.subr.bf16.mxu1 %v1255_v51  ;;  %v571_v57 = vmax.f32 %v400_v53, 0.0 }
 0x12c   :  { %v404_v54 = vpop.f32.mrb[38].mxu0  ;;  %1258 = vmatpush3.bf16.msra.mxu1 %v1725_v13 }
 0x12d   :  { %v405_v55 = vadd.f32 %v1715_v58, %v404_v54  ;;  %v1149_v56 = vpop.f32.mrb[39].mxu0 }
 0x12f   :  { %v572_v59 = vmax.f32 %v405_v55, 0.0 }
 0x130   :  { %v409_v63 = vpop.f32.mrb[40].mxu0 }
 0x131   :  { %v1259_v0 = vpack.c.bf16 %v572_v59, %v571_v57  ;;  %v1152_v1 = vpop.f32.mrb[41].mxu0  ;;  %v410_v2 = vadd.f32 %v1715_v58, %v409_v63 }
 0x133   :  { %1260 = vmatprep.subr.bf16.mxu1 %v1259_v0  ;;  %v573_v10 = vmax.f32 %v410_v2, 0.0 }
 0x134   :  { %v414_v4 = vpop.f32.mrb[42].mxu0  ;;  %1262 = vmatpush3.bf16.msra.mxu1 %v1733_v31 }
 0x135   :  { %v415_v5 = vadd.f32 %v1715_v58, %v414_v4  ;;  %v1155_v9 = vpop.f32.mrb[43].mxu0 }
 0x137   :  { %v574_v11 = vmax.f32 %v415_v5, 0.0  ;;  %v982_v5 = vld [vmem:[%s1881_s5] ss:$0 sm:$0xff] }
 0x138   :  { %v419_v13 = vpop.f32.mrb[44].mxu0 }
 0x139   :  { %v1263_v12 = vpack.c.bf16 %v574_v11, %v573_v10  ;;  %v1158_v14 = vpop.f32.mrb[45].mxu0  ;;  %v420_v15 = vadd.f32 %v1715_v58, %v419_v13 }
 0x13b   :  { %1264 = vmatprep.subr.bf16.mxu1 %v1263_v12  ;;  %v575_v20 = vmax.f32 %v420_v15, 0.0 }
 0x13c   :  { %v424_v16 = vpop.f32.mrb[46].mxu0  ;;  %1266 = vmatpush3.bf16.msra.mxu1 %v1741_v49 }
 0x13d   :  { %v425_v17 = vadd.f32 %v1715_v58, %v424_v16  ;;  %v1161_v18 = vpop.f32.mrb[47].mxu0 }
 0x13f   :  { %v576_v22 = vmax.f32 %v425_v17, 0.0 }
 0x140   :  { %v429_v31 = vpop.f32.mrb[48].mxu0 }
 0x141   :  { %v1267_v23 = vpack.c.bf16 %v576_v22, %v575_v20  ;;  %v1164_v25 = vpop.f32.mrb[49].mxu0  ;;  %v430_v26 = vadd.f32 %v1715_v58, %v429_v31 }
 0x143   :  { %1268 = vmatprep.subr.bf16.mxu1 %v1267_v23  ;;  %v577_v33 = vmax.f32 %v430_v26, 0.0 }
 0x144   :  { %v434_v28 = vpop.f32.mrb[50].mxu0  ;;  %1270 = vmatpush3.bf16.msra.mxu1 %v1749_v7 }
 0x145   :  { %v435_v29 = vadd.f32 %v1715_v58, %v434_v28  ;;  %v1167_v32 = vpop.f32.mrb[51].mxu0 }
 0x147   :  { %v578_v34 = vmax.f32 %v435_v29, 0.0 }
 0x148   :  { %v439_v49 = vpop.f32.mrb[52].mxu0 }
 0x149   :  { %v1271_v35 = vpack.c.bf16 %v578_v34, %v577_v33  ;;  %v1170_v36 = vpop.f32.mrb[53].mxu0  ;;  %v440_v37 = vadd.f32 %v1715_v58, %v439_v49 }
 0x14b   :  { %1272 = vmatprep.subr.bf16.mxu1 %v1271_v35  ;;  %v579_v45 = vmax.f32 %v440_v37, 0.0 }
 0x14c   :  { %v444_v38 = vpop.f32.mrb[54].mxu0  ;;  %1274 = vmatpush3.bf16.msra.mxu1 %v1757_v27  ;;  %v465_v27 = vadd.f32 %v1715_v58, %v1717_v60  ;;  %v602_v60 = vld [vmem:[%s1877_s1] sm:$0xff] }
 0x14d   :  { %v445_v41 = vadd.f32 %v1715_v58, %v444_v38  ;;  %v1173_v43 = vpop.f32.mrb[55].mxu0 }
 0x14e   :  { %v584_v1 = vmax.f32 %v465_v27, 0.0 }
 0x14f   :  { %v580_v46 = vmax.f32 %v445_v41, 0.0 }
 0x150   :  { %v449_v7 = vpop.f32.mrb[56].mxu0 }
 0x151   :  { %v1275_v48 = vpack.c.bf16 %v580_v46, %v579_v45  ;;  %v1176_v50 = vpop.f32.mrb[57].mxu0  ;;  %v450_v51 = vadd.f32 %v1715_v58, %v449_v7 }
 0x153   :  { %1276 = vmatprep.subr.bf16.mxu1 %v1275_v48  ;;  %v581_v55 = vmax.f32 %v450_v51, 0.0 }
 0x154   :  { %v454_v52 = vpop.f32.mrb[58].mxu0  ;;  %1278 = vmatpush3.bf16.msra.mxu1 %v1765_v47  ;;  %v605_v47 = vld [vmem:[%s1877_s1 + $0x18] sm:$0xff] }
 0x155   :  { %v455_v53 = vadd.f32 %v1715_v58, %v454_v52  ;;  %v1179_v54 = vpop.f32.mrb[59].mxu0 }
 0x157   :  { %v582_v56 = vmax.f32 %v455_v53, 0.0 }
 0x158   :  { %v459_v57 = vpop.f32.mrb[60].mxu0 }
 0x159   :  { %v1279_v59 = vpack.c.bf16 %v582_v56, %v581_v55  ;;  %v460_v63 = vadd.f32 %v1715_v58, %v459_v57  ;;  %v1182_v0 = vpop.f32.mrb[61].mxu0 }
 0x15b   :  { %v583_v2 = vmax.f32 %v460_v63, 0.0  ;;  %1280 = vmatprep.subr.bf16.mxu1 %v1279_v59 }
 0x15c   :  { %1282 = vmatpush3.bf16.msra.mxu1 %v1773_v8 }
 0x15d   :  { %v1283_v4 = vpack.c.bf16 %v584_v1, %v583_v2 }
 0x15f   :  { %1284 = vmatprep.subr.bf16.mxu1 %v1283_v4 }
 0x160   :  { %1286 = vmatpush3.bf16.msra.mxu1 %v1781_v30 }
 0x161   :  { %1287 = vmatprep.subr.bf16.mxu1 %v1348_v3 }
 0x163   :  { %675 = vmatmul.mubr.f32.vlgmr.msra.gmra.mrb[36].mxu1 %v602_v60 }
 0x164   :  { %1289 = vmatpush1.bf16.msra.mxu1 %v1730_v24  ;;  %981 = vmatprep.mubr.msk.f32.mxu1 %vm606_vm3, %v605_v47  ;;  %v550_v24 = vadd.f32 %v1715_v58, %v1785_v40  ;;  %v750_v58 = vld [vmem:[%s1880_s4] sm:$0xff] }
 0x165   :  { %1290 = vmatprep.subr.bf16.mxu1 %v1348_v3  ;;  %v832_v40 = vld [vmem:[%s1882_s6] sm:$0xff] }
 0x168   :  { %1292 = vmatpush1.bf16.msra.mxu1 %v1738_v42  ;;  %v601_v42 = vmax.f32 %v550_v24, 0.0 }
 0x169   :  { %1293 = vmatprep.subr.bf16.mxu1 %v1348_v3 }
 0x16c   :  { %1295 = vmatpush1.bf16.msra.mxu1 %v1746_v62  ;;  %v604_v62 = vld [vmem:[%s1877_s1 + $0x10] sm:$0xff] }
 0x16d   :  { %1296 = vmatprep.subr.bf16.mxu1 %v1348_v3 }
 0x170   :  { %1298 = vmatpush1.bf16.msra.mxu1 %v1754_v19 }
 0x171   :  { %1299 = vmatprep.subr.bf16.mxu1 %v1348_v3 }
 0x174   :  { %1301 = vmatpush1.bf16.msra.mxu1 %v1762_v39 }
 0x175   :  { %1302 = vmatprep.subr.bf16.mxu1 %v1348_v3 }
 0x178   :  { %1304 = vmatpush1.bf16.msra.mxu1 %v1770_v61 }
 0x179   :  { %1305 = vmatprep.subr.bf16.mxu1 %v1348_v3 }
 0x17c   :  { %1307 = vmatpush1.bf16.msra.mxu1 %v1778_v21 }
 0x17d   :  { %1308 = vmatprep.subr.bf16.mxu1 %v1348_v3 }
 0x180   :  { %1310 = vmatpush1.bf16.msra.mxu1 %v1788_v44  ;;  %v833_v44 = vld [vmem:[%s1882_s6 + $0x8] sm:$0xff]  ;;  %s1324_s6 = scalar_lea.vmem %s923_s15, 128 }
 0x181   :  { %712 = vmatprep.subr.mxu1 %v1350_v6  ;;  %p1325_p0 = scmp.ne.s32.totalorder %s923_s15, %s1324_s6  ;;  %p1330_p2 = scmp.lt.s32.totalorder %s1324_s6, %s1324_s6 }
 0x183   :  { %p1331_p3 = por %p1330_p2, %p1329_p1 }
 0x184   :  { %713 = vmatpush1.msra.mxu1 %v601_v42 }
 0x185   :  { %745 = vmatmul.mubr.f32.vlgmr.msra.gmra.mrb[38].mxu1 %v604_v62  ;;  %1237 = vmatprep.subr.mxu1 %v1350_v6  ;;  %p1332_p4 = pnand %p1331_p3, %p1325_p0 }
 0x186   :  { %1239 = vmatprep.mubr.msk.f32.mxu1 %vm1349_vm0, %v1350_v6  ;;  %1238 = vmatpush3.msra.mxu1 %v750_v58 }
 0x187   :  { %1311 = vmatprep.subr.bf16.mxu1 %v1348_v3  ;;  %v1312_v3 = vpack.c.bf16 %v833_v44, %v832_v40 }
 0x236   :  { %v1072_v19 = vpop.f32.mrb[36].mxu1 }
 0x237   :  { %v1073_v39 = vpop.f32.mrb[37].mxu1 }
 0x238   :  { %v1074_v61 = vadd.f32 %v1073_v39, %v1072_v19 }
 0x258   :  { %v746_v8 = vpop.f32.mrb[38].mxu1 }
 0x259   :  { %v747_v21 = vadd.f32 %v1074_v61, %v746_v8  ;;  %v748_v30 = vpop.f32.mrb[39].mxu1 }
 0x25b   :  { %1240 = vmatmul.mubr.msk.f32.vlgmr.msra.gmra.mrb[40].mxu1 %vm606_vm3, %v747_v21 }
 0x25c   :  { %1246 = vmatprep.mubr.msk.f32.mxu1 %vm1349_vm0, %v1350_v6  ;;  %1313 = vmatpush3.bf16.msra.mxu1 %v1312_v3  ;;  %v984_v6 = vld [vmem:[%s1883_s7] ss:$0 sm:$0xff] }
 0x32e   :  { %v827_v9 = vpop.f32.mrb[40].mxu1 }
 0x32f   :  { %v828_v10 = vadd.f32 %v982_v5, %v827_v9  ;;  %v1241_v11 = vpop.f32.mrb[41].mxu1 }
 0x331   :  { %v831_v13 = vmax.f32 %v828_v10, 0.0 }
 0x333   :  { %1247 = vmatmul.mubr.msk.f32.vlgmr.msra.gmra.mrb[42].mxu1 %vm841_vm4, %v831_v13 }
 0x406   :  { %v911_v12 = vpop.f32.mrb[42].mxu1 }
 0x407   :  { %v912_v14 = vadd.f32 %v984_v6, %v911_v12  ;;  %v1248_v15 = vpop.f32.mrb[43].mxu1 }
 0x409   :  { %915 = vst [vmem:[#allocation2] sm:$0xff] %v912_v14 }
 0x40a   :  { %1335 = shalt.err (!%p1332_p4)
}
 0x40b   :  { %s1336_s17 = scalar_lea.hbm %s1884_s8, 128 }
 0x40c   :  { %p1337_p5 = scmp.ne.s32.totalorder %s1884_s8, %s1336_s17  ;;  %p1340_p6 = scmp.lt.u32.totalorder %s1336_s17, %s1884_s8 }
 0x40e   :  { %p1342_p7 = pnand %p1340_p6, %p1337_p5 }
 0x410   :  { %1345 = shalt.err (!%p1342_p7)
}
 0x411   :  { %925 = dma.vmem_to_hbm [thread:$0]  %s923_s15, 128, %s1884_s8, [#allocation3]  }
 0x412   :  { %1346 = dma.done.wait [#allocation3], 128  }
 0x413   :  { %1347 = vsyncadd [#allocation3], 4294967168 }
 0x414   :  { %929 = vsyncpa [#allocation3], 1 }

</bundles_post_ra>
